<compile_context>
chip_gen: v6e
topology: v6e:2x2x1
jax: 0.10.0
libtpu: 0.0.40
codegen_flags: <defaults>
</compile_context>

<pallas_src>
import jax
import jax.numpy as jnp
from jax import lax
from jax.experimental import pallas as pl
from jax.experimental.pallas import tpu as pltpu


BN_EPS = 1e-5
LRELU_ALPHA = 0.2

VMEM_LIMIT_BYTES = 48 * 1024 * 1024   # explicit scoped-VMEM cap (all gens)
VMEM_BUDGET_BYTES = 28 * 1024 * 1024  # tile-sizing budget (fits v7x's 64 MiB)


def _round_up(x, m):
    return (x + m - 1) // m * m


def _pick_divisor_tile(m, cap):
    """Largest multiple of 8 that divides m and is <= cap (None if none)."""
    cap = min(cap, m)
    cap -= cap % 8
    for tm in range(cap, 7, -8):
        if m % tm == 0:
            return tm
    return None


# ---------------------------------------------------------------------------
# Pass 1 kernels: conv-as-matmul + per-tile channel sum / sumsq partials
# ---------------------------------------------------------------------------
def _conv_stats_kernel(patches_ref, w_ref, y_ref, stats_ref):
    # (TM, Kf) bf16 @ (Kf, C_pad) bf16 -> f32 on the MXU.
    y = jnp.dot(patches_ref[...], w_ref[...], preferred_element_type=jnp.float32)
    y_ref[...] = y.astype(y_ref.dtype)
    # Per-tile partial stats.  Padded rows / padded weight columns are exactly
    # zero by construction, so no row masking is needed.
    stats_ref[0:1, :] = jnp.sum(y, axis=0, keepdims=True)
    stats_ref[1:2, :] = jnp.sum(y * y, axis=0, keepdims=True)


def _conv_stats_ktiled_kernel(patches_ref, w_ref, y_ref, stats_ref, acc_ref):
    k = pl.program_id(1)

    @pl.when(k == 0)
    def _init():
        acc_ref[...] = jnp.zeros_like(acc_ref)

    acc_ref[...] += jnp.dot(patches_ref[...], w_ref[...],
                            preferred_element_type=jnp.float32)

    @pl.when(k == pl.num_programs(1) - 1)
    def _finalize():
        y = acc_ref[...]
        y_ref[...] = y.astype(y_ref.dtype)
        stats_ref[0:1, :] = jnp.sum(y, axis=0, keepdims=True)
        stats_ref[1:2, :] = jnp.sum(y * y, axis=0, keepdims=True)


# ---------------------------------------------------------------------------
# Pass 2 kernel: fused BN scale/shift + LeakyReLU
# ---------------------------------------------------------------------------
def _bn_lrelu_kernel(y_ref, a_ref, b_ref, out_ref):
    z = y_ref[...].astype(jnp.float32) * a_ref[...] + b_ref[...]
    out_ref[...] = jnp.where(z > 0, z, LRELU_ALPHA * z).astype(out_ref.dtype)


# ---------------------------------------------------------------------------
# im2col (wrapper glue): one NHWC bf16 copy, channel-padded, (kh,kw,c) order
# ---------------------------------------------------------------------------
def _im2col_nhwc(x_nchw, kernel_size, stride, padding, c_in_pad):
    N, C, H, W = x_nchw.shape
    K = kernel_size
    H_out = (H + 2 * padding - K) // stride + 1
    W_out = (W + 2 * padding - K) // stride + 1
    x = x_nchw.astype(jnp.bfloat16).transpose(0, 2, 3, 1)          # (N,H,W,C)
    x = jnp.pad(x, ((0, 0), (padding, padding), (padding, padding),
                    (0, c_in_pad - C)))
    cols = []
    for kh in range(K):
        for kw in range(K):
            cols.append(x[:, kh:kh + stride * H_out:stride,
                          kw:kw + stride * W_out:stride, :])        # (N,Ho,Wo,Cp)
    p = jnp.concatenate(cols, axis=-1)                              # (N,Ho,Wo,K*K*Cp)
    return p.reshape(N * H_out * W_out, K * K * c_in_pad), H_out, W_out


def d_block_forward(x, conv_weight, gamma, beta,
                    kernel_size=4, stride=2, padding=1):
    """x: (N, C_in, H, W) NCHW; conv_weight: (C_out, C_in, K, K) PyTorch layout.

    Returns the LeakyReLU(BN(conv(x))) activation in bf16, NCHW.
    """
    N, C_in, H, W = x.shape
    C_out = conv_weight.shape[0]
    K = kernel_size

    c_in_pad = _round_up(C_in, 8)
    C_pad = _round_up(C_out, 128)

    # ---- im2col (bf16, feature order kh,kw,c) ----
    patches, H_out, W_out = _im2col_nhwc(x, K, stride, padding, c_in_pad)
    M, Kf = patches.shape

    # Weight reordered to match the patch feature order, channels zero-padded.
    w = conv_weight.astype(jnp.bfloat16).transpose(2, 3, 1, 0)      # (K,K,Cin,Cout)
    w = jnp.pad(w, ((0, 0), (0, 0), (0, c_in_pad - C_in), (0, C_pad - C_out)))
    w_p = w.reshape(Kf, C_pad)

    # ---- Tiling policy for pass 1 ----
    TK = Kf
    if Kf > 4096:
        for cand in (4096, 2048, 1024, 512, 256, 128):
            if Kf % cand == 0:
                TK = cand
                break
    ktiled = TK < Kf
    n_k = Kf // TK

    fixed = 2 * TK * C_pad * 2 + 2 * 8 * C_pad * 4        # weights (dbuf) + stats
    per_row = 2 * TK * 2 + 2 * C_pad * 2 + (C_pad * 4 if ktiled else 0)
    tm_cap1 = max(8, (VMEM_BUDGET_BYTES - fixed) // per_row)
    tm_cap1 = min(tm_cap1, 1024)

    TM1 = _pick_divisor_tile(M, tm_cap1)
    if TM1 is None or (TM1 < 128 and M > 1024):
        TM1 = min(tm_cap1, 512, _round_up(M, 8))
        TM1 = max(8, TM1 - TM1 % 8)
        M_pad = _round_up(M, TM1)
        # Only the (< TM1)-row remainder is zero-padded; zeros keep stats exact.
        patches = jnp.pad(patches, ((0, M_pad - M), (0, 0)))
    else:
        M_pad = M
    n_tiles1 = M_pad // TM1

    # ---- Pass 1: conv matmul + per-tile channel statistics ----
    if not ktiled:
        y, stats = pl.pallas_call(
            _conv_stats_kernel,
            grid=(n_tiles1,),
            in_specs=[
                pl.BlockSpec((TM1, Kf), lambda i: (i, 0)),
                pl.BlockSpec((Kf, C_pad), lambda i: (0, 0)),
            ],
            out_specs=(
                pl.BlockSpec((TM1, C_pad), lambda i: (i, 0)),
                pl.BlockSpec((8, C_pad), lambda i: (i, 0)),
            ),
            out_shape=(
                jax.ShapeDtypeStruct((M_pad, C_pad), jnp.bfloat16),
                jax.ShapeDtypeStruct((n_tiles1 * 8, C_pad), jnp.float32),
            ),
            compiler_params=pltpu.CompilerParams(
                dimension_semantics=("parallel",),
                vmem_limit_bytes=VMEM_LIMIT_BYTES),
        )(patches, w_p)
    else:
        y, stats = pl.pallas_call(
            _conv_stats_ktiled_kernel,
            grid=(n_tiles1, n_k),
            in_specs=[
                pl.BlockSpec((TM1, TK), lambda i, k: (i, k)),
                pl.BlockSpec((TK, C_pad), lambda i, k: (k, 0)),
            ],
            out_specs=(
                pl.BlockSpec((TM1, C_pad), lambda i, k: (i, 0)),
                pl.BlockSpec((8, C_pad), lambda i, k: (i, 0)),
            ),
            out_shape=(
                jax.ShapeDtypeStruct((M_pad, C_pad), jnp.bfloat16),
                jax.ShapeDtypeStruct((n_tiles1 * 8, C_pad), jnp.float32),
            ),
            scratch_shapes=[pltpu.VMEM((TM1, C_pad), jnp.float32)],
            compiler_params=pltpu.CompilerParams(
                dimension_semantics=("parallel", "arbitrary"),
                vmem_limit_bytes=VMEM_LIMIT_BYTES),
        )(patches, w_p)

    # ---- Tiny per-channel BN fold (plain JAX, C-sized) ----
    stats3 = stats.reshape(n_tiles1, 8, C_pad)
    sum_c = jnp.sum(stats3[:, 0, :], axis=0)
    sumsq_c = jnp.sum(stats3[:, 1, :], axis=0)
    mean = sum_c / jnp.float32(M)
    var = jnp.maximum(sumsq_c / jnp.float32(M) - mean * mean, 0.0)   # biased var
    gamma_p = jnp.zeros((C_pad,), jnp.float32).at[:C_out].set(gamma.astype(jnp.float32))
    beta_p = jnp.zeros((C_pad,), jnp.float32).at[:C_out].set(beta.astype(jnp.float32))
    a = gamma_p * lax.rsqrt(var + BN_EPS)
    b = beta_p - mean * a
    a2 = a.reshape(1, C_pad)
    b2 = b.reshape(1, C_pad)

    # ---- Pass 2: fused scale/shift + LeakyReLU (bf16 in / bf16 out) ----
    per_row2 = 2 * C_pad * 2 + 2 * C_pad * 2
    tm_cap2 = max(8, min(2048, VMEM_BUDGET_BYTES // per_row2))
    TM2 = _pick_divisor_tile(M_pad, tm_cap2) or TM1
    n_tiles2 = M_pad // TM2

    out = pl.pallas_call(
        _bn_lrelu_kernel,
        grid=(n_tiles2,),
        in_specs=[
            pl.BlockSpec((TM2, C_pad), lambda i: (i, 0)),
            pl.BlockSpec((1, C_pad), lambda i: (0, 0)),
            pl.BlockSpec((1, C_pad), lambda i: (0, 0)),
        ],
        out_specs=pl.BlockSpec((TM2, C_pad), lambda i: (i, 0)),
        out_shape=jax.ShapeDtypeStruct((M_pad, C_pad), jnp.bfloat16),
        compiler_params=pltpu.CompilerParams(
            dimension_semantics=("parallel",),
            vmem_limit_bytes=VMEM_LIMIT_BYTES),
    )(y, a2, b2)

    # Slice away padding, back to NCHW (module semantics), stay bf16.
    out = out[:M, :C_out].reshape(N, H_out, W_out, C_out).transpose(0, 3, 1, 2)
    return out


# ---------------------------------------------------------------------------
# Pure-JAX reference for validation
# ---------------------------------------------------------------------------
def _reference_forward(x, conv_weight, gamma, beta,
                       kernel_size=4, stride=2, padding=1):
    y = lax.conv_general_dilated(
        x.astype(jnp.float32), conv_weight.astype(jnp.float32),
        window_strides=(stride, stride),
        padding=[(padding, padding), (padding, padding)],
        dimension_numbers=("NCHW", "OIHW", "NCHW"))
    mean = jnp.mean(y, axis=(0, 2, 3), keepdims=True)
    var = jnp.mean((y - mean) ** 2, axis=(0, 2, 3), keepdims=True)  # biased
    y_hat = (y - mean) * lax.rsqrt(var + BN_EPS)
    y_bn = y_hat * gamma.reshape(1, -1, 1, 1) + beta.reshape(1, -1, 1, 1)
    return jnp.where(y_bn > 0, y_bn, LRELU_ALPHA * y_bn)


if __name__ == "__main__":
    # Small deterministic example: channels=4, nc=3, spatial=16, batch=2.
    key = jax.random.PRNGKey(0)
    k_x, k_w = jax.random.split(key)

    N, C_in, H, W = 2, 3, 16, 16
    C_out, K = 4, 4

    x = jax.random.normal(k_x, (N, C_in, H, W), dtype=jnp.float32)
    # Deterministic conv weight init (kaiming-uniform-like scale), no bias.
    fan_in = C_in * K * K
    bound = 1.0 / jnp.sqrt(jnp.float32(fan_in))
    conv_w = jax.random.uniform(k_w, (C_out, C_in, K, K),
                                minval=-bound, maxval=bound, dtype=jnp.float32)
    # BatchNorm affine params at their PyTorch defaults.
    gamma = jnp.ones((C_out,), dtype=jnp.float32)
    beta = jnp.zeros((C_out,), dtype=jnp.float32)

    y = d_block_forward(x, conv_w, gamma, beta)
    jax.block_until_ready(y)
    assert y.shape == (N, C_out, H // 2, W // 2), y.shape

    ref = _reference_forward(x, conv_w, gamma, beta)
    max_err = float(jnp.max(jnp.abs(y.astype(jnp.float32) - ref)))
    assert max_err < 5e-2, f"max abs error vs reference: {max_err}"

    print("KERNEL_OK")
</pallas_src>

<mosaic_0001>
module attributes {stable_mosaic.version = 11 : i64} {
  func.func @_conv_stats_kernel(%arg0: i32, %arg1: memref<128x128xbf16, #tpu.memory_space<vmem>>, %arg2: memref<128x128xbf16, #tpu.memory_space<vmem>>, %arg3: memref<128x128xbf16, #tpu.memory_space<vmem>>, %arg4: memref<8x128xf32, #tpu.memory_space<vmem>>) attributes {dimension_semantics = [#tpu.dimension_semantics<parallel>], iteration_bounds = array<i64: 1>, scalar_prefetch = 0 : i64, scratch_operands = 0 : i64, tpu.core_type = #tpu.core_type<tc>, window_params = [{transform_indices = @transform_0, window_bounds = array<i64: 128, 128>}, {pipeline_mode = #tpu.pipeline_mode<synchronous>, transform_indices = @transform_1, window_bounds = array<i64: 128, 128>}, {transform_indices = @transform_2, window_bounds = array<i64: 128, 128>}, {transform_indices = @transform_3, window_bounds = array<i64: 8, 128>}]} {
    %c0 = arith.constant 0 : index
    %c0_0 = arith.constant 0 : index
    %0 = vector.load %arg1[%c0, %c0_0] : memref<128x128xbf16, #tpu.memory_space<vmem>>, vector<128x128xbf16>
    %c0_1 = arith.constant 0 : index
    %c0_2 = arith.constant 0 : index
    %1 = vector.load %arg2[%c0_1, %c0_2] : memref<128x128xbf16, #tpu.memory_space<vmem>>, vector<128x128xbf16>
    %cst = arith.constant dense<0.000000e+00> : vector<128x128xf32>
    %2 = tpu.matmul %0, %1, %cst {dimension_numbers = #tpu.dot_dimension_numbers<[1], [0], [0], [1], [0, 0, 1, 1], [], []>} : vector<128x128xbf16>, vector<128x128xbf16>, vector<128x128xf32> -> vector<128x128xf32>
    %3 = arith.truncf %2 : vector<128x128xf32> to vector<128x128xbf16>
    %c0_3 = arith.constant 0 : index
    %c0_4 = arith.constant 0 : index
    %4 = vector.load %arg3[%c0_3, %c0_4] : memref<128x128xbf16, #tpu.memory_space<vmem>>, vector<128x128xbf16>
    tpu.vector_store %arg3[%c0_3, %c0_4], %3 {strides = array<i32>} : memref<128x128xbf16, #tpu.memory_space<vmem>>, vector<128x128xbf16>,
    %cst_5 = arith.constant dense<0.000000e+00> : vector<128xf32>
    %5 = vector.multi_reduction <add>, %2, %cst_5 [0] : vector<128x128xf32> to vector<128xf32>
    %6 = vector.shape_cast %5 : vector<128xf32> to vector<1x128xf32>
    %c0_6 = arith.constant 0 : index
    %c0_7 = arith.constant 0 : index
    %7 = vector.load %arg4[%c0_6, %c0_7] : memref<8x128xf32, #tpu.memory_space<vmem>>, vector<1x128xf32>
    tpu.vector_store %arg4[%c0_6, %c0_7], %6 {strides = array<i32>} : memref<8x128xf32, #tpu.memory_space<vmem>>, vector<1x128xf32>,
    %8 = arith.mulf %2, %2 : vector<128x128xf32>
    %cst_8 = arith.constant dense<0.000000e+00> : vector<128xf32>
    %9 = vector.multi_reduction <add>, %8, %cst_8 [0] : vector<128x128xf32> to vector<128xf32>
    %10 = vector.shape_cast %9 : vector<128xf32> to vector<1x128xf32>
    %c1 = arith.constant 1 : index
    %c0_9 = arith.constant 0 : index
    %11 = vector.load %arg4[%c1, %c0_9] : memref<8x128xf32, #tpu.memory_space<vmem>>, vector<1x128xf32>
    tpu.vector_store %arg4[%c1, %c0_9], %10 {strides = array<i32>} : memref<8x128xf32, #tpu.memory_space<vmem>>, vector<1x128xf32>,
    return
  }
  func.func @transform_0(%arg0: i32) -> (i32, i32) {
    %c0_i32 = arith.constant 0 : i32
    %c0_i32_0 = arith.constant 0 : i32
    return %arg0, %c0_i32 : i32, i32
  }
  func.func @transform_1(%arg0: i32) -> (i32, i32) {
    %c0_i32 = arith.constant 0 : i32
    %c0_i32_0 = arith.constant 0 : i32
    %c0_i32_1 = arith.constant 0 : i32
    return %c0_i32, %c0_i32_0 : i32, i32
  }
  func.func @transform_2(%arg0: i32) -> (i32, i32) {
    %c0_i32 = arith.constant 0 : i32
    %c0_i32_0 = arith.constant 0 : i32
    return %arg0, %c0_i32 : i32, i32
  }
  func.func @transform_3(%arg0: i32) -> (i32, i32) {
    %c0_i32 = arith.constant 0 : i32
    %c0_i32_0 = arith.constant 0 : i32
    return %arg0, %c0_i32 : i32, i32
  }
}

</mosaic_0001>

<bundles_post_ra>
// kernel: tpu_custom_call.1
= control target key start
LH: loop header
LB: loop body
LE: loop exit
PB: predicated region body
PF: predicated region fallthrough
CT: control target
= control target key end

     0   :  { %9 = vsyncpa [#allocation3], 0  ;;  %s781_s0 = inlined_call_operand.hbm [shape: bf16[128,128], index: 0, kind: input, shape index: {}]   ;;  %s782_s1 = inlined_call_operand.hbm [shape: bf16[128,128], index: 1, kind: input, shape index: {}]   ;;  %s783_s2 = inlined_call_operand.hbm [shape: bf16[128,128], index: 2, kind: output, shape index: {0}]   ;;  %s784_s3 = inlined_call_operand.hbm [shape: f32[8,128], index: 3, kind: output, shape index: {1}]  }
   0x1   :  { %10 = vsyncpa [#allocation6], 0 }
   0x2   :  { %11 = vsyncpa [#allocation4], 0 }
   0x3   :  { %12 = vsyncpa [#allocation9], 0  ;;  %s710_s12 = smov [#allocation2]  }
   0x4   :  { %s18_s13 = sshll.u32 %s710_s12, 4  ;;  %s19_s13 = int_to_ptr.vmem [resolvable:$true] %s18_s13 }
   0x5   :  { %s630_s14 = scalar_lea.vmem %s19_s13, 1024  ;;  %p635_p1 = scmp.lt.s32.totalorder %s19_s13, %s19_s13 }
   0x6   :  { %p631_p0 = scmp.ne.s32.totalorder %s19_s13, %s630_s14  ;;  %p636_p2 = scmp.lt.s32.totalorder %s630_s14, %s630_s14 }
   0x8   :  { %p637_p3 = por %p636_p2, %p635_p1 }
   0xa   :  { %p638_p4 = pnand %p637_p3, %p631_p0 }
   0xc   :  { %641 = shalt.err (!%p638_p4)
}
   0xd   :  { %s711_s15 = smov 64   ;;  %s712_s16 = smov 4  }
   0xe   :  { %24 = dma.hbm_to_vmem [thread:$0]  %s781_s0, 1024, %s19_s13, [#allocation3], %s711_s15, %s711_s15, %s712_s16  }
   0xf   :  { %s713_s19 = smov [#allocation5]  }
  0x10   :  { %s30_s20 = sshll.u32 %s713_s19, 4  ;;  %s31_s20 = int_to_ptr.vmem [resolvable:$true] %s30_s20 }
  0x11   :  { %s650_s21 = scalar_lea.vmem %s31_s20, 1024  ;;  %p655_p6 = scmp.lt.s32.totalorder %s31_s20, %s31_s20 }
  0x12   :  { %p651_p5 = scmp.ne.s32.totalorder %s31_s20, %s650_s21  ;;  %p656_p7 = scmp.lt.s32.totalorder %s650_s21, %s650_s21 }
  0x14   :  { %p657_p8 = por %p656_p7, %p655_p6 }
  0x16   :  { %p658_p9 = pnand %p657_p8, %p651_p5 }
  0x18   :  { %661 = shalt.err (!%p658_p9)
}
  0x19   :  { %36 = dma.hbm_to_vmem [thread:$0]  %s782_s1, 1024, %s31_s20, [#allocation6], %s711_s15, %s711_s15, %s712_s16  }
  0x1a   :  { %702 = dma.done.wait [#allocation3], 1024  }
  0x1b   :  { %703 = vsyncadd [#allocation3], 4294966272 }
  0x1c   :  { %704 = dma.done.wait [#allocation6], 1024  }
  0x1d   :  { %705 = vsyncadd [#allocation6], 4294966272  ;;  %v606_v0 = vld [vmem:[#allocation5 + $0x38] sm:$0xff]   ;;  %v607_v1 = vld [vmem:[#allocation5 + $0x30] sm:$0xff]   ;;  %s714_s0 = smov [#allocation7]  }
  0x1e   :  { %552 = vmatprep.subr.bf16.mxu0 %v606_v0  ;;  %584 = vmatprep.subr.bf16.mxu1 %v606_v0  ;;  %v608_v2 = vld [vmem:[#allocation5 + $0x28] sm:$0xff]   ;;  %v609_v3 = vld [vmem:[#allocation5 + $0x20] sm:$0xff]   ;;  %v610_v5 = vld [vmem:[#allocation5 + $0x18] sm:$0xff]   ;;  %s414_s1 = sshll.u32 %s714_s0, 4  ;;  %s415_s1 = int_to_ptr.vmem [resolvable:$true] %s414_s1 }
  0x1f   :  { %553 = vmatpush3.bf16.msra.mxu0 %v606_v0  ;;  %592 = vmatpush3.bf16.msra.mxu1 %v606_v0  ;;  %v614_v4 = vld [vmem:[#allocation2] sm:$0xff]   ;;  %v611_v7 = vld [vmem:[#allocation5 + $0x10] sm:$0xff]   ;;  %v612_v8 = vld [vmem:[#allocation5 + $0x8] sm:$0xff]   ;;  %s662_s24 = scalar_lea.vmem %s415_s1, 1024  ;;  %p667_p11 = scmp.lt.s32.totalorder %s415_s1, %s415_s1 }
  0x20   :  { %554 = vmatprep.subr.bf16.mxu0 %v607_v1  ;;  %585 = vmatprep.subr.bf16.mxu1 %v607_v1  ;;  %v618_v6 = vld [vmem:[#allocation2 + $0x20] sm:$0xff]   ;;  %v615_v10 = vld [vmem:[#allocation2 + $0x8] sm:$0xff]   ;;  %v616_v12 = vld [vmem:[#allocation2 + $0x10] sm:$0xff]   ;;  %p663_p10 = scmp.ne.s32.totalorder %s415_s1, %s662_s24  ;;  %p668_p12 = scmp.lt.s32.totalorder %s662_s24, %s662_s24 }
  0x21   :  { %568 = vmatprep.mubr.bf16.mxu0 %v614_v4  ;;  %576 = vmatprep.mubr.bf16.mxu1 %v618_v6  ;;  %v613_v9 = vld [vmem:[#allocation5] sm:$0xff]   ;;  %v619_v11 = vld [vmem:[#allocation2 + $0x28] sm:$0xff]   ;;  %v620_v13 = vld [vmem:[#allocation2 + $0x30] sm:$0xff]  }
  0x22   :  { %v617_v14 = vld [vmem:[#allocation2 + $0x18] sm:$0xff]   ;;  %p669_p13 = por %p668_p12, %p667_p11 }
  0x23   :  { %555 = vmatpush3.bf16.msra.mxu0 %v607_v1  ;;  %593 = vmatpush3.bf16.msra.mxu1 %v607_v1  ;;  %v621_v15 = vld [vmem:[#allocation2 + $0x38] sm:$0xff]  }
  0x24   :  { %556 = vmatprep.subr.bf16.mxu0 %v608_v2  ;;  %586 = vmatprep.subr.bf16.mxu1 %v608_v2  ;;  %p670_p0 = pnand %p669_p13, %p663_p10 }
  0x27   :  { %557 = vmatpush3.bf16.msra.mxu0 %v608_v2  ;;  %594 = vmatpush3.bf16.msra.mxu1 %v608_v2 }
  0x28   :  { %558 = vmatprep.subr.bf16.mxu0 %v609_v3  ;;  %587 = vmatprep.subr.bf16.mxu1 %v609_v3 }
  0x2b   :  { %559 = vmatpush3.bf16.msra.mxu0 %v609_v3  ;;  %595 = vmatpush3.bf16.msra.mxu1 %v609_v3 }
  0x2c   :  { %560 = vmatprep.subr.bf16.mxu0 %v610_v5  ;;  %588 = vmatprep.subr.bf16.mxu1 %v610_v5 }
  0x2f   :  { %561 = vmatpush3.bf16.msra.mxu0 %v610_v5  ;;  %596 = vmatpush3.bf16.msra.mxu1 %v610_v5 }
  0x30   :  { %562 = vmatprep.subr.bf16.mxu0 %v611_v7  ;;  %589 = vmatprep.subr.bf16.mxu1 %v611_v7 }
  0x33   :  { %563 = vmatpush3.bf16.msra.mxu0 %v611_v7  ;;  %597 = vmatpush3.bf16.msra.mxu1 %v611_v7 }
  0x34   :  { %564 = vmatprep.subr.bf16.mxu0 %v612_v8  ;;  %590 = vmatprep.subr.bf16.mxu1 %v612_v8 }
  0x37   :  { %565 = vmatpush3.bf16.msra.mxu0 %v612_v8  ;;  %598 = vmatpush3.bf16.msra.mxu1 %v612_v8 }
  0x38   :  { %566 = vmatprep.subr.bf16.mxu0 %v613_v9  ;;  %591 = vmatprep.subr.bf16.mxu1 %v613_v9 }
  0x3b   :  { %567 = vmatpush3.bf16.msra.mxu0 %v613_v9  ;;  %599 = vmatpush3.bf16.msra.mxu1 %v613_v9 }
  0x3e   :  { %569 = vmatmul.mubr.bf16.vlgmr.msra.gmra.mxu0 %v615_v10  ;;  %577 = vmatmul.mubr.bf16.vlgmr.msra.gmra.mxu1 %v619_v11 }
  0x3f   :  { %572 = vmatprep.mubr.bf16.mxu0 %v616_v12  ;;  %580 = vmatprep.mubr.bf16.mxu1 %v620_v13 }
  0x46   :  { %573 = vmatmul.mubr.bf16.gmra.mxu0 %v617_v14  ;;  %581 = vmatmul.mubr.bf16.gmra.mxu1 %v621_v15 }
  0xfe   :  { %v570_v16 = vpop.f32.mrf.mxu0  ;;  %v748_v17 = vpop.f32.mrf.mxu1 }
  0xff   :  { %v373_v33 = vmul.f32 %v570_v16, %v570_v16 }
 0x100   :  { %v206_v18 = vpop.f32.mrf.mxu0  ;;  %v750_v19 = vpop.f32.mrf.mxu1 }
 0x101   :  { %v371_v24 = vmul.f32 %v206_v18, %v206_v18 }
 0x102   :  { %v571_v20 = vpop.f32.mrf.mxu0  ;;  %v752_v21 = vpop.f32.mrf.mxu1 }
 0x103   :  { %v497_v22 = vpack.c.bf16 %v571_v20, %v570_v16  ;;  %v517_v23 = vpack.c.bf16 %v752_v21, %v748_v17  ;;  %v374_v38 = vmul.f32 %v571_v20, %v571_v20 }
 0x104   :  { %v209_v25 = vpop.f32.mrf.mxu0  ;;  %v241_v26 = vpop.f32.mrf.mxu1 }
 0x105   :  { %529 = vst [vmem:[#allocation7 + $0x8] sm:$0xff] %v497_v22   ;;  %v492_v27 = vpack.c.bf16 %v209_v25, %v206_v18  ;;  %v349_v28 = vadd.f32 %v209_v25, %v206_v18  ;;  %v372_v29 = vmul.f32 %v209_v25, %v209_v25  ;;  %533 = vst [vmem:[#allocation7 + $0x28] sm:$0xff] %v517_v23  }
 0x106   :  { %v512_v30 = vpack.c.bf16 %v241_v26, %v750_v19  ;;  %v574_v31 = vpop.f32.mrf.mxu0  ;;  %v757_v32 = vpop.f32.mrf.mxu1 }
 0x107   :  { %493 = vst [vmem:[#allocation7] sm:$0xff] %v492_v27   ;;  %v350_v34 = vadd.f32 %v570_v16, %v349_v28  ;;  %v387_v35 = vadd.f32 %v372_v29, %v371_v24  ;;  %v377_v55 = vmul.f32 %v574_v31, %v574_v31 }
 0x108   :  { %532 = vst [vmem:[#allocation7 + $0x20] sm:$0xff] %v512_v30   ;;  %v222_v36 = vpop.f32.mrf.mxu0  ;;  %v254_v37 = vpop.f32.mrf.mxu1 }
 0x109   :  { %v388_v39 = vadd.f32 %v387_v35, %v373_v33  ;;  %v351_v40 = vadd.f32 %v571_v20, %v350_v34  ;;  %v375_v44 = vmul.f32 %v222_v36, %v222_v36 }
 0x10a   :  { %v575_v41 = vpop.f32.mrf.mxu0  ;;  %v583_v42 = vpop.f32.mrf.mxu1 }
 0x10b   :  { %v352_v43 = vadd.f32 %v351_v40, %v222_v36  ;;  %v389_v45 = vadd.f32 %v388_v39, %v374_v38  ;;  %v507_v46 = vpack.c.bf16 %v575_v41, %v574_v31  ;;  %v527_v48 = vpack.c.bf16 %v583_v42, %v757_v32 }
 0x10c   :  { %v225_v47 = vpop.f32.mrf.mxu0  ;;  %v257_v49 = vpop.f32.mrf.mxu1  ;;  %v378_v58 = vmul.f32 %v575_v41, %v575_v41 }
 0x10d   :  { %v390_v50 = vadd.f32 %v389_v45, %v375_v44  ;;  %531 = vst [vmem:[#allocation7 + $0x18] sm:$0xff] %v507_v46   ;;  %v502_v51 = vpack.c.bf16 %v225_v47, %v222_v36  ;;  %v353_v52 = vadd.f32 %v352_v43, %v225_v47  ;;  %v376_v53 = vmul.f32 %v225_v47, %v225_v47 }
 0x10e   :  { %535 = vst [vmem:[#allocation7 + $0x38] sm:$0xff] %v527_v48   ;;  %v522_v54 = vpack.c.bf16 %v257_v49, %v254_v37 }
 0x10f   :  { %530 = vst [vmem:[#allocation7 + $0x10] sm:$0xff] %v502_v51   ;;  %v354_v56 = vadd.f32 %v574_v31, %v353_v52  ;;  %v391_v57 = vadd.f32 %v390_v50, %v376_v53 }
 0x110   :  { %534 = vst [vmem:[#allocation7 + $0x30] sm:$0xff] %v522_v54  }
 0x111   :  { %v355_v59 = vadd.f32 %v575_v41, %v354_v56  ;;  %v392_v60 = vadd.f32 %v391_v57, %v377_v55 }
 0x112   :  { %673 = shalt.err (!%p670_p0)
}
 0x113   :  { %420 = dma.vmem_to_hbm [thread:$0]  %s415_s1, 1024, %s783_s2, [#allocation4], %s711_s15, %s711_s15, %s712_s16   ;;  %v379_v61 = vmul.f32 %v750_v19, %v750_v19  ;;  %v393_v62 = vadd.f32 %v392_v60, %v378_v58  ;;  %v356_v63 = vadd.f32 %v355_v59, %v750_v19  ;;  %v380_v1 = vmul.f32 %v241_v26, %v241_v26 }
 0x114   :  { %v381_v3 = vmul.f32 %v748_v17, %v748_v17  ;;  %v382_v6 = vmul.f32 %v752_v21, %v752_v21  ;;  %v383_v10 = vmul.f32 %v254_v37, %v254_v37  ;;  %v384_v14 = vmul.f32 %v257_v49, %v257_v49  ;;  %s715_s2 = smov [#allocation8]  }
 0x115   :  { %v357_v0 = vadd.f32 %v356_v63, %v241_v26  ;;  %v394_v2 = vadd.f32 %v393_v62, %v379_v61  ;;  %v385_v15 = vmul.f32 %v757_v32, %v757_v32  ;;  %s427_s27 = sshll.u32 %s715_s2, 4  ;;  %s428_s27 = int_to_ptr.vmem [resolvable:$true] %s427_s27 }
 0x116   :  { %s682_s28 = scalar_lea.vmem %s428_s27, 128  ;;  %p687_p2 = scmp.lt.s32.totalorder %s428_s27, %s428_s27 }
 0x117   :  { %v358_v4 = vadd.f32 %v748_v17, %v357_v0  ;;  %v395_v5 = vadd.f32 %v394_v2, %v380_v1  ;;  %v386_v17 = vmul.f32 %v583_v42, %v583_v42  ;;  %p683_p1 = scmp.ne.s32.totalorder %s428_s27, %s682_s28  ;;  %p688_p3 = scmp.lt.s32.totalorder %s682_s28, %s682_s28 }
 0x119   :  { %v396_v7 = vadd.f32 %v395_v5, %v381_v3  ;;  %v359_v8 = vadd.f32 %v752_v21, %v358_v4  ;;  %p689_p4 = por %p688_p3, %p687_p2 }
 0x11b   :  { %v360_v9 = vadd.f32 %v359_v8, %v254_v37  ;;  %v397_v11 = vadd.f32 %v396_v7, %v382_v6  ;;  %p690_p5 = pnand %p689_p4, %p683_p1 }
 0x11d   :  { %v398_v12 = vadd.f32 %v397_v11, %v383_v10  ;;  %v361_v13 = vadd.f32 %v360_v9, %v257_v49 }
 0x11f   :  { %v362_v16 = vadd.f32 %v757_v32, %v361_v13  ;;  %v399_v18 = vadd.f32 %v398_v12, %v384_v14 }
 0x121   :  { %v363_v19 = vadd.f32 %v583_v42, %v362_v16  ;;  %v400_v20 = vadd.f32 %v399_v18, %v385_v15 }
 0x123   :  { %v364_v22 = vrot.slane %v363_v19, 4  ;;  %v401_v23 = vadd.f32 %v400_v20, %v386_v17 }
 0x125   :  { %v365_v24 = vadd.f32 %v364_v22, %v363_v19  ;;  %v402_v25 = vrot.slane %v401_v23, 4 }
 0x127   :  { %v366_v21 = vrot.slane %v365_v24, 2  ;;  %v403_v26 = vadd.f32 %v402_v25, %v401_v23 }
 0x129   :  { %v367_v27 = vadd.f32 %v366_v21, %v365_v24  ;;  %v404_v28 = vrot.slane %v403_v26, 2 }
 0x12b   :  { %v368_v29 = vrot.slane %v367_v27, 1  ;;  %v405_v30 = vadd.f32 %v404_v28, %v403_v26 }
 0x12d   :  { %v369_v31 = vadd.f32 %v368_v29, %v367_v27  ;;  %v406_v33 = vrot.slane %v405_v30, 1 }
 0x12f   :  { %370 = vst [vmem:[#allocation8] sm:$0x1] %v369_v31  ;;  %v407_v32 = vadd.f32 %v406_v33, %v405_v30 }
 0x131   :  { %408 = vst [vmem:[#allocation8 + $0x1] sm:$0x1] %v407_v32 }
 0x132   :  { %693 = shalt.err (!%p690_p5)
}
 0x133   :  { %430 = dma.vmem_to_hbm [thread:$0]  %s428_s27, 128, %s784_s3, [#allocation9]  }
 0x134   :  { %706 = dma.done.wait [#allocation4], 1024  }
 0x135   :  { %707 = vsyncadd [#allocation4], 4294966272 }
 0x136   :  { %708 = dma.done.wait [#allocation9], 128  }
 0x137   :  { %709 = vsyncadd [#allocation9], 4294967168 }
 0x138   :  { %437 = vsyncpa [#allocation3], 1 }
 0x139   :  { %438 = vsyncpa [#allocation6], 1 }
 0x13a   :  { %439 = vsyncpa [#allocation4], 1 }
 0x13b   :  { %440 = vsyncpa [#allocation9], 1 }

</bundles_post_ra>
